<compile_context>
chip_gen: v7x
topology: tpu7x:2x2x1
jax: 0.10.0
libtpu: 0.0.40
codegen_flags: <defaults>
</compile_context>

<pallas_src>
import jax
import jax.numpy as jnp
from jax.experimental import pallas as pl
from jax.experimental.pallas import tpu as pltpu


_LANE = 128          # vocab axis padded up to a multiple of the lane width
_SUBLANE_BF16 = 16   # bf16 packs 16 sublanes per vreg -> pad batch to 16
_NEG_INF = -1e30     # bias for padded vocab columns -> exp underflows to 0


def _round_up(x, m):
    return (x + m - 1) // m * m


def decoder_kernel(x_ref, wdec_ref, bdec_ref, wcat_ref, bcat_ref, out_ref):
    """Fused decoder forward: dec linear + tanh + 3 vocab projections + softmax.

    Shapes seen by the kernel (whole arrays resident in VMEM, no grid):
      x_ref    : (Bp, E)      f32   (= h_r + h_v + z, gathered/summed in wrapper)
      wdec_ref : (E, H)       bf16
      bdec_ref : (1, H)       f32
      wcat_ref : (H, 3*Vp)    bf16  (sub|obj|target projections, vocab-padded)
      bcat_ref : (1, 3*Vp)    f32   (padded cols carry -1e30; MUST stay f32)
      out_ref  : (3, Bp, Vp)  f32   softmax probabilities per projection
    """
    cdt = wdec_ref.dtype                      # bf16 compute dtype for MXU operands
    Vp = out_ref.shape[2]

    # h = tanh(dec_linear(h_r + h_v + z))
    h = jnp.tanh(
        jnp.dot(x_ref[...].astype(cdt), wdec_ref[...],
                preferred_element_type=jnp.float32) + bdec_ref[...])
    # TODO(synk): nn.Dropout is identity in eval mode; training-mode dropout
    # (pltpu.prng_random_bits mask) is not emitted here.

    # One fused, lane-dense projection matmul: (Bp, H) x (H, 3*Vp).
    logits = (jnp.dot(h.astype(cdt), wcat_ref[...],
                      preferred_element_type=jnp.float32) + bcat_ref[...])

    # Numerically stable softmax over each Vp-wide third (static, lane-aligned
    # slices; padded columns produce exactly 0 probability).
    for k in range(3):
        lk = logits[:, k * Vp:(k + 1) * Vp]
        m = jnp.max(lk, axis=-1, keepdims=True)
        e = jnp.exp(lk - m)
        out_ref[k] = e / jnp.sum(e, axis=-1, keepdims=True)   # exact reciprocal


@jax.jit
def simple_decoder_forward(r, v, z, params):
    """r, v: int32 (B,) index vectors; z: float32 (B, E).

    Returns (prob_sub, prob_obj, prob_target), each (B, V) f32 softmax probs.
    `params` must come from prepare_params() (fused/padded/bf16 weights).
    """
    rel = params["rel_embeddings"]                      # (R, E) f32
    wemb = params["word_embeddings"]                    # (V, E) f32
    wdec, bdec = params["w_dec"], params["b_dec"]       # (E, H) bf16, (1, H) f32
    wcat, bcat = params["w_cat"], params["b_cat"]       # (H, 3*Vp) bf16, (1, 3*Vp) f32

    B, E = z.shape
    V = wemb.shape[0]
    H = wdec.shape[1]
    Vp = wcat.shape[1] // 3
    Bp = _round_up(B, _SUBLANE_BF16)

    # Embedding lookups as plain gathers in the wrapper (B*E is tiny); the
    # (V, E) table never enters VMEM.  Pad batch rows with zeros (sliced off).
    h_r = jnp.take(rel, r.astype(jnp.int32), axis=0)
    h_v = jnp.take(wemb, v.astype(jnp.int32), axis=0)
    x = (h_r + h_v + z).astype(jnp.float32)
    x = jnp.pad(x, ((0, Bp - B), (0, 0)))

    # Explicit VMEM budget from the actual buffers (cap at v7x's 64 MiB ceiling;
    # 4x margin covers layout padding / compiler scratch).
    def _nbytes(shape, dtype):
        n = 1
        for s in shape:
            n *= s
        return n * jnp.dtype(dtype).itemsize

    needed = (_nbytes((Bp, E), jnp.float32)
              + _nbytes(wdec.shape, wdec.dtype) + _nbytes(bdec.shape, bdec.dtype)
              + _nbytes(wcat.shape, wcat.dtype) + _nbytes(bcat.shape, bcat.dtype)
              + _nbytes((3, Bp, Vp), jnp.float32))
    vmem_limit = int(min(64 * 1024 * 1024, max(4 * 1024 * 1024, 4 * needed)))

    vmem_spec = pl.BlockSpec(memory_space=pltpu.MemorySpace.VMEM)
    probs = pl.pallas_call(
        decoder_kernel,
        out_shape=jax.ShapeDtypeStruct((3, Bp, Vp), jnp.float32),
        in_specs=[vmem_spec] * 5,
        out_specs=vmem_spec,
        compiler_params=pltpu.CompilerParams(vmem_limit_bytes=vmem_limit),
    )(x, wdec, bdec, wcat, bcat)

    # Leading-axis slices are contiguous (near-free), unlike column slices.
    prob_sub = probs[0, :B, :V]
    prob_obj = probs[1, :B, :V]
    prob_tgt = probs[2, :B, :V]
    return prob_sub, prob_obj, prob_tgt


# ----------------------------- parameter plumbing -----------------------------

def init_params(key, vocab_size, embedding_dim, hidden_dim, num_relations):
    """Module-style (PyTorch-equivalent) f32 parameters."""
    ks = jax.random.split(key, 10)

    def lin(kw, kb, fan_in, fan_out):
        # PyTorch nn.Linear init: U(-1/sqrt(fan_in), 1/sqrt(fan_in)).
        # Stored as (in, out) = transpose of PyTorch's (out, in) weight.
        bound = 1.0 / jnp.sqrt(fan_in)
        w = jax.random.uniform(kw, (fan_in, fan_out), jnp.float32, -bound, bound)
        b = jax.random.uniform(kb, (1, fan_out), jnp.float32, -bound, bound)
        return w, b

    w_dec, b_dec = lin(ks[0], ks[1], embedding_dim, hidden_dim)
    w_sub, b_sub = lin(ks[2], ks[3], hidden_dim, vocab_size)
    w_obj, b_obj = lin(ks[4], ks[5], hidden_dim, vocab_size)
    w_tgt, b_tgt = lin(ks[6], ks[7], hidden_dim, vocab_size)

    word_embeddings = jax.random.normal(ks[8], (vocab_size, embedding_dim), jnp.float32)
    rel_embeddings = jax.random.normal(ks[9], (num_relations, embedding_dim), jnp.float32)

    return dict(
        word_embeddings=word_embeddings, rel_embeddings=rel_embeddings,
        w_dec=w_dec, b_dec=b_dec,
        w_sub=w_sub, b_sub=b_sub,
        w_obj=w_obj, b_obj=b_obj,
        w_tgt=w_tgt, b_tgt=b_tgt,
    )


def prepare_params(raw):
    """Fuse + pad + bf16-cast once at init time (not per forward call)."""
    V = raw["word_embeddings"].shape[0]
    Vp = _round_up(V, _LANE)

    def pad_proj(w, b):
        w = jnp.pad(w, ((0, 0), (0, Vp - V)))                              # zero weight cols
        b = jnp.pad(b, ((0, 0), (0, Vp - V)), constant_values=_NEG_INF)    # -inf-ish bias
        return w, b

    ws, bs = pad_proj(raw["w_sub"], raw["b_sub"])
    wo, bo = pad_proj(raw["w_obj"], raw["b_obj"])
    wt, bt = pad_proj(raw["w_tgt"], raw["b_tgt"])

    return dict(
        # Embedding tables stay f32: they are gathered in the wrapper, not
        # streamed through VMEM, so there is no bandwidth win from bf16.
        word_embeddings=raw["word_embeddings"].astype(jnp.float32),
        rel_embeddings=raw["rel_embeddings"].astype(jnp.float32),
        w_dec=raw["w_dec"].astype(jnp.bfloat16),
        b_dec=raw["b_dec"].astype(jnp.float32),
        w_cat=jnp.concatenate([ws, wo, wt], axis=1).astype(jnp.bfloat16),  # (H, 3*Vp)
        b_cat=jnp.concatenate([bs, bo, bt], axis=1).astype(jnp.float32),   # (1, 3*Vp), MUST stay f32
    )


def reference_forward(r, v, z, raw):
    """Pure-JAX f32 reference matching the PyTorch module (eval mode)."""
    h_r = jnp.take(raw["rel_embeddings"], r, axis=0)
    h_v = jnp.take(raw["word_embeddings"], v, axis=0)
    h = jnp.tanh((h_r + h_v + z) @ raw["w_dec"] + raw["b_dec"])
    sm = lambda l: jax.nn.softmax(l, axis=-1)
    return (sm(h @ raw["w_sub"] + raw["b_sub"]),
            sm(h @ raw["w_obj"] + raw["b_obj"]),
            sm(h @ raw["w_tgt"] + raw["b_tgt"]))


if __name__ == "__main__":
    # small config consistent with the module
    VOCAB = 64          # config.word_embeddings.shape[0]
    EMB = 32            # config.word_embeddings.shape[1]
    HIDDEN = 32         # config.decoder_hidden_dim
    NUM_REL = 10        # config.num_relations
    B = 8               # batch

    key = jax.random.PRNGKey(0)
    kp, kr, kv, kz = jax.random.split(key, 4)

    raw_params = init_params(kp, VOCAB, EMB, HIDDEN, NUM_REL)
    params = prepare_params(raw_params)

    r = jax.random.randint(kr, (B,), 0, NUM_REL, dtype=jnp.int32)
    v = jax.random.randint(kv, (B,), 0, VOCAB, dtype=jnp.int32)
    z = jax.random.normal(kz, (B, EMB), jnp.float32)

    prob_sub, prob_obj, prob_tgt = simple_decoder_forward(r, v, z, params)
    jax.block_until_ready((prob_sub, prob_obj, prob_tgt))

    # shape + softmax-normalization sanity (exact reciprocal -> tight atol)
    assert prob_sub.shape == (B, VOCAB)
    assert prob_obj.shape == (B, VOCAB)
    assert prob_tgt.shape == (B, VOCAB)
    for p in (prob_sub, prob_obj, prob_tgt):
        assert jnp.allclose(jnp.sum(p, axis=-1), 1.0, atol=1e-4)

    # agreement with the f32 pure-JAX reference (bf16 weights in kernel -> loose)
    ref_sub, ref_obj, ref_tgt = reference_forward(r, v, z, raw_params)
    assert jnp.max(jnp.abs(prob_sub - ref_sub)) < 5e-2
    assert jnp.max(jnp.abs(prob_obj - ref_obj)) < 5e-2
    assert jnp.max(jnp.abs(prob_tgt - ref_tgt)) < 5e-2

    print("KERNEL_OK")
</pallas_src>

<mosaic_0001>
module attributes {stable_mosaic.version = 11 : i64} {
  func.func @decoder_kernel(%arg0: memref<16x32xf32, #tpu.memory_space<vmem>>, %arg1: memref<32x32xbf16, #tpu.memory_space<vmem>>, %arg2: memref<1x32xf32, #tpu.memory_space<vmem>>, %arg3: memref<32x384xbf16, #tpu.memory_space<vmem>>, %arg4: memref<1x384xf32, #tpu.memory_space<vmem>>, %arg5: memref<3x16x128xf32, #tpu.memory_space<vmem>>) attributes {dimension_semantics = [], scalar_prefetch = 0 : i64, scratch_operands = 0 : i64, tpu.core_type = #tpu.core_type<tc>} {
    %c0 = arith.constant 0 : index
    %c0_0 = arith.constant 0 : index
    %0 = vector.load %arg0[%c0, %c0_0] : memref<16x32xf32, #tpu.memory_space<vmem>>, vector<16x32xf32>
    %1 = arith.truncf %0 : vector<16x32xf32> to vector<16x32xbf16>
    %c0_1 = arith.constant 0 : index
    %c0_2 = arith.constant 0 : index
    %2 = vector.load %arg1[%c0_1, %c0_2] : memref<32x32xbf16, #tpu.memory_space<vmem>>, vector<32x32xbf16>
    %cst = arith.constant dense<0.000000e+00> : vector<16x32xf32>
    %3 = tpu.matmul %1, %2, %cst {dimension_numbers = #tpu.dot_dimension_numbers<[1], [0], [0], [1], [0, 0, 1, 1], [], []>} : vector<16x32xbf16>, vector<32x32xbf16>, vector<16x32xf32> -> vector<16x32xf32>
    %c0_3 = arith.constant 0 : index
    %c0_4 = arith.constant 0 : index
    %4 = vector.load %arg2[%c0_3, %c0_4] : memref<1x32xf32, #tpu.memory_space<vmem>>, vector<1x32xf32>
    %5 = vector.broadcast %4 : vector<1x32xf32> to vector<16x32xf32>
    %6 = arith.addf %3, %5 : vector<16x32xf32>
    %7 = math.tanh %6 : vector<16x32xf32>
    %8 = arith.truncf %7 : vector<16x32xf32> to vector<16x32xbf16>
    %c0_5 = arith.constant 0 : index
    %c0_6 = arith.constant 0 : index
    %9 = vector.load %arg3[%c0_5, %c0_6] : memref<32x384xbf16, #tpu.memory_space<vmem>>, vector<32x384xbf16>
    %cst_7 = arith.constant dense<0.000000e+00> : vector<16x384xf32>
    %10 = tpu.matmul %8, %9, %cst_7 {dimension_numbers = #tpu.dot_dimension_numbers<[1], [0], [0], [1], [0, 0, 1, 1], [], []>} : vector<16x32xbf16>, vector<32x384xbf16>, vector<16x384xf32> -> vector<16x384xf32>
    %c0_8 = arith.constant 0 : index
    %c0_9 = arith.constant 0 : index
    %11 = vector.load %arg4[%c0_8, %c0_9] : memref<1x384xf32, #tpu.memory_space<vmem>>, vector<1x384xf32>
    %12 = vector.broadcast %11 : vector<1x384xf32> to vector<16x384xf32>
    %13 = arith.addf %10, %12 : vector<16x384xf32>
    %14 = vector.extract_strided_slice %13 {offsets = [0, 0], sizes = [16, 128], strides = [1, 1]} : vector<16x384xf32> to vector<16x128xf32>
    %cst_10 = arith.constant dense<0xFF800000> : vector<16xf32>
    %15 = vector.multi_reduction <maximumf>, %14, %cst_10 [1] : vector<16x128xf32> to vector<16xf32>
    %16 = vector.shape_cast %15 : vector<16xf32> to vector<16x1xf32>
    %17 = vector.broadcast %16 : vector<16x1xf32> to vector<16x128xf32>
    %18 = arith.subf %14, %17 : vector<16x128xf32>
    %19 = math.exp %18 : vector<16x128xf32>
    %cst_11 = arith.constant dense<0.000000e+00> : vector<16xf32>
    %20 = vector.multi_reduction <add>, %19, %cst_11 [1] : vector<16x128xf32> to vector<16xf32>
    %21 = vector.shape_cast %20 : vector<16xf32> to vector<16x1xf32>
    %22 = vector.broadcast %21 : vector<16x1xf32> to vector<16x128xf32>
    %23 = arith.divf %19, %22 : vector<16x128xf32>
    %c0_12 = arith.constant 0 : index
    %c0_13 = arith.constant 0 : index
    %c0_14 = arith.constant 0 : index
    %24 = vector.load %arg5[%c0_12, %c0_13, %c0_14] : memref<3x16x128xf32, #tpu.memory_space<vmem>>, vector<1x16x128xf32>
    %25 = vector.shape_cast %24 : vector<1x16x128xf32> to vector<16x128xf32>
    %26 = vector.shape_cast %23 : vector<16x128xf32> to vector<1x16x128xf32>
    tpu.vector_store %arg5[%c0_12, %c0_13, %c0_14], %26 {strides = array<i32>} : memref<3x16x128xf32, #tpu.memory_space<vmem>>, vector<1x16x128xf32>,
    %27 = vector.extract_strided_slice %13 {offsets = [0, 128], sizes = [16, 128], strides = [1, 1]} : vector<16x384xf32> to vector<16x128xf32>
    %cst_15 = arith.constant dense<0xFF800000> : vector<16xf32>
    %28 = vector.multi_reduction <maximumf>, %27, %cst_15 [1] : vector<16x128xf32> to vector<16xf32>
    %29 = vector.shape_cast %28 : vector<16xf32> to vector<16x1xf32>
    %30 = vector.broadcast %29 : vector<16x1xf32> to vector<16x128xf32>
    %31 = arith.subf %27, %30 : vector<16x128xf32>
    %32 = math.exp %31 : vector<16x128xf32>
    %cst_16 = arith.constant dense<0.000000e+00> : vector<16xf32>
    %33 = vector.multi_reduction <add>, %32, %cst_16 [1] : vector<16x128xf32> to vector<16xf32>
    %34 = vector.shape_cast %33 : vector<16xf32> to vector<16x1xf32>
    %35 = vector.broadcast %34 : vector<16x1xf32> to vector<16x128xf32>
    %36 = arith.divf %32, %35 : vector<16x128xf32>
    %c1 = arith.constant 1 : index
    %c0_17 = arith.constant 0 : index
    %c0_18 = arith.constant 0 : index
    %37 = vector.load %arg5[%c1, %c0_17, %c0_18] : memref<3x16x128xf32, #tpu.memory_space<vmem>>, vector<1x16x128xf32>
    %38 = vector.shape_cast %37 : vector<1x16x128xf32> to vector<16x128xf32>
    %39 = vector.shape_cast %36 : vector<16x128xf32> to vector<1x16x128xf32>
    tpu.vector_store %arg5[%c1, %c0_17, %c0_18], %39 {strides = array<i32>} : memref<3x16x128xf32, #tpu.memory_space<vmem>>, vector<1x16x128xf32>,
    %40 = vector.extract_strided_slice %13 {offsets = [0, 256], sizes = [16, 128], strides = [1, 1]} : vector<16x384xf32> to vector<16x128xf32>
    %cst_19 = arith.constant dense<0xFF800000> : vector<16xf32>
    %41 = vector.multi_reduction <maximumf>, %40, %cst_19 [1] : vector<16x128xf32> to vector<16xf32>
    %42 = vector.shape_cast %41 : vector<16xf32> to vector<16x1xf32>
    %43 = vector.broadcast %42 : vector<16x1xf32> to vector<16x128xf32>
    %44 = arith.subf %40, %43 : vector<16x128xf32>
    %45 = math.exp %44 : vector<16x128xf32>
    %cst_20 = arith.constant dense<0.000000e+00> : vector<16xf32>
    %46 = vector.multi_reduction <add>, %45, %cst_20 [1] : vector<16x128xf32> to vector<16xf32>
    %47 = vector.shape_cast %46 : vector<16xf32> to vector<16x1xf32>
    %48 = vector.broadcast %47 : vector<16x1xf32> to vector<16x128xf32>
    %49 = arith.divf %45, %48 : vector<16x128xf32>
    %c2 = arith.constant 2 : index
    %c0_21 = arith.constant 0 : index
    %c0_22 = arith.constant 0 : index
    %50 = vector.load %arg5[%c2, %c0_21, %c0_22] : memref<3x16x128xf32, #tpu.memory_space<vmem>>, vector<1x16x128xf32>
    %51 = vector.shape_cast %50 : vector<1x16x128xf32> to vector<16x128xf32>
    %52 = vector.shape_cast %49 : vector<16x128xf32> to vector<1x16x128xf32>
    tpu.vector_store %arg5[%c2, %c0_21, %c0_22], %52 {strides = array<i32>} : memref<3x16x128xf32, #tpu.memory_space<vmem>>, vector<1x16x128xf32>,
    return
  }
}

</mosaic_0001>

<bundles_post_ra>
// kernel: simple_decoder_forward.1
= control target key start
LH: loop header
LB: loop body
LE: loop exit
PB: predicated region body
PF: predicated region fallthrough
CT: control target
= control target key end

     0   :  { %v384_v0 = vmov 0.0   ;;  %vm385_vm0 = vmmov 0   ;;  %vm47_vm1 = vcmask 261120   ;;  %v386_v7 = vmov 0   ;;  %s474_s1 = inlined_call_operand.vmem [shape: bf16[32,32], index: 1, kind: input, shape index: {}]   ;;  %s475_s0 = inlined_call_operand.vmem [shape: f32[16,32], index: 0, kind: input, shape index: {}]   ;;  %s476_s3 = inlined_call_operand.vmem [shape: bf16[32,384], index: 3, kind: input, shape index: {}]   ;;  %s477_s2 = inlined_call_operand.vmem [shape: f32[1,32], index: 2, kind: input, shape index: {}]   ;;  %s478_s4 = inlined_call_operand.vmem [shape: f32[1,384], index: 4, kind: input, shape index: {}]   ;;  %s479_s5 = inlined_call_operand.vmem [shape: f32[3,16,128], index: 5, kind: output, shape index: {}]  }
   0x1   :  { %327 = vmatprep.subr.bf16.mxu0 %v384_v0  ;;  %v346_v1 = vld [vmem:[%s474_s1] sm:$0xff]   ;;  %331 = vmatprep.mubr.msk.bf16.mxu0 %vm385_vm0, %v384_v0  ;;  %v347_v2 = vld [vmem:[%s474_s1 + $0x8] sm:$0xff]   ;;  %v105_v23 = vlaneseq }
   0x2   :  { %328 = vmatpush3.bf16.msra.mxu0 %v346_v1  ;;  %v21_v3 = vld [vmem:[%s475_s0] sm:$0xff]  ;;  %v22_v4 = vld [vmem:[%s475_s0 + $0x8] sm:$0xff]  ;;  %187 = vmatprep.mubr.bf16.mxu1 %v386_v7 }
   0x3   :  { %329 = vmatprep.subr.bf16.mxu0 %v384_v0  ;;  %v23_v5 = vpack.c.bf16 %v22_v4, %v21_v3  ;;  %v348_v6 = vld [vmem:[%s476_s3 + $0x4] ss:$12 sps:$4 sm:$0xff]   ;;  %v350_v8 = vld [vmem:[%s476_s3] ss:$12 sps:$4 sm:$0xff]   ;;  %v351_v9 = vld [vmem:[%s476_s3 + $0x8] ss:$12 sps:$4 sm:$0xff]  }
   0x4   :  { %155 = vmatprep.subr.bf16.mxu1 %v348_v6  ;;  %v352_v10 = vld [vmem:[%s476_s3 + $0x1c] ss:$12 sps:$4 sm:$0xff]   ;;  %v354_v11 = vld [vmem:[%s476_s3 + $0x18] ss:$12 sps:$4 sm:$0xff]   ;;  %v355_v12 = vld [vmem:[%s476_s3 + $0x20] ss:$12 sps:$4 sm:$0xff]  }
   0x5   :  { %156 = vmatpush1.bf16.msra.mxu1 %v350_v8  ;;  %v305_v13 = vld [vmem:[%s477_s2] ss:$0 sm:$0xff]  ;;  %v106_v24 = vshrl.u32 %v105_v23, 7 }
   0x6   :  { %330 = vmatpush3.bf16.msra.mxu0 %v347_v2  ;;  %157 = vmatprep.subr.bf16.mxu1 %v352_v10  ;;  %v103_v26 = vld [vmem:[%s478_s4] sm:$0x7] }
   0x7   :  { %335 = vmatprep.subr.bf16.mxu0 %v384_v0  ;;  %v107_v25 = vsub.s32 0, %v106_v24  ;;  %v111_v27 = vsub.s32 1, %v106_v24  ;;  %v115_v33 = vsub.s32 2, %v106_v24 }
   0x9   :  { %332 = vmatmul.mubr.msk.bf16.vlgmr.msra.gmra.mrb[0].mxu0 %vm47_vm1, %v23_v5  ;;  %158 = vmatpush1.bf16.msra.mxu1 %v354_v11  ;;  %v108_v28 = vrot.slane %v103_v26, %v107_v25  ;;  %v112_v29 = vrot.slane %v103_v26, %v111_v27  ;;  %v116_v41 = vrot.slane %v103_v26, %v115_v33 }
   0xa   :  { %339 = vmatprep.mubr.msk.bf16.mxu0 %vm385_vm0, %v384_v0  ;;  %336 = vmatpush3.bf16.msra.mxu0 %v351_v9 }
   0xb   :  { %337 = vmatprep.subr.bf16.mxu0 %v384_v0 }
   0xe   :  { %338 = vmatpush3.bf16.msra.mxu0 %v355_v12 }
  0xdc   :  { %v85_v14 = vpop.f32.mrb[0].mxu0 }
  0xdd   :  { %v86_v15 = vadd.f32 %v305_v13, %v85_v14  ;;  %v333_v16 = vpop.f32.mrb[1].mxu0 }
  0xde   :  { %v88_v17 = vpop.f32.mrb[2].mxu0 }
  0xdf   :  { %v89_v18 = vadd.f32 %v305_v13, %v88_v17  ;;  %v334_v19 = vpop.f32.mrb[3].mxu0  ;;  %356 = vtanh.f32 %v86_v15 }
  0xe1   :  { %358 = vtanh.f32 %v89_v18 }
  0xe9   :  { %v357_v20 = vpop.eup %356 }
  0xeb   :  { %v359_v21 = vpop.eup %358 }
  0xec   :  { %v94_v22 = vpack.c.bf16 %v359_v21, %v357_v20 }
  0xee   :  { %315 = vmatmul.mubr.msk.bf16.vlgmr.msra.gmra.mrb[0].mxu1 %vm47_vm1, %v94_v22  ;;  %340 = vmatmul.mubr.msk.bf16.vlgmr.msra.gmra.mrb[4].mxu0 %vm47_vm1, %v94_v22 }
 0x1c1   :  { %v189_v30 = vpop.f32.mrb[0].mxu1  ;;  %v232_v31 = vpop.f32.mrb[4].mxu0 }
 0x1c2   :  { %v190_v32 = vadd.f32 %v189_v30, %v108_v28  ;;  %v191_v34 = vpop.f32.mrb[1].mxu1  ;;  %v341_v35 = vpop.f32.mrb[5].mxu0  ;;  %v233_v44 = vadd.f32 %v232_v31, %v116_v41 }
 0x1c3   :  { %v192_v36 = vadd.f32 %v191_v34, %v112_v29  ;;  %v193_v37 = vpop.f32.mrb[2].mxu1  ;;  %v235_v38 = vpop.f32.mrb[6].mxu0 }
 0x1c4   :  { %v195_v39 = vpop.f32.mrb[3].mxu1  ;;  %239 = vmax.xlane.f32.xlu0 %v190_v32  ;;  %v342_v40 = vpop.f32.mrb[7].mxu0  ;;  %v194_v42 = vadd.f32 %v193_v37, %v108_v28  ;;  %v236_v45 = vadd.f32 %v235_v38, %v116_v41 }
 0x1c5   :  { %259 = vmax.xlane.f32.xlu1 %v192_v36  ;;  %v196_v43 = vadd.f32 %v195_v39, %v112_v29 }
 0x1c8   :  { %241 = vmax.xlane.f32.xlu0 %v194_v42 }
 0x1c9   :  { %261 = vmax.xlane.f32.xlu1 %v196_v43 }
 0x1cc   :  { %280 = vmax.xlane.f32.xlu0 %v233_v44 }
 0x1cd   :  { %282 = vmax.xlane.f32.xlu1 %v236_v45 }
 0x251   :  { %v240_v46 = vpop.xlane.xlu0 %239 }
 0x252   :  { %v243_v47 = vsub.f32 %v190_v32, %v240_v46  ;;  %v260_v48 = vpop.xlane.xlu1 %259 }
 0x253   :  { %v263_v49 = vsub.f32 %v192_v36, %v260_v48 }
 0x254   :  { %v245_v50 = vmul.f32 1.442695, %v243_v47 }
 0x255   :  { %v265_v51 = vmul.f32 1.442695, %v263_v49  ;;  %v242_v52 = vpop.xlane.xlu0 %241 }
 0x256   :  { %360 = vpow2.f32 %v245_v50  ;;  %v244_v53 = vsub.f32 %v194_v42, %v242_v52  ;;  %v262_v54 = vpop.xlane.xlu1 %261 }
 0x257   :  { %v264_v55 = vsub.f32 %v196_v43, %v262_v54  ;;  %362 = vpow2.f32 %v265_v51 }
 0x258   :  { %v247_v56 = vmul.f32 1.442695, %v244_v53 }
 0x259   :  { %v267_v57 = vmul.f32 1.442695, %v264_v55  ;;  %v281_v58 = vpop.xlane.xlu0 %280 }
 0x25a   :  { %364 = vpow2.f32 %v247_v56  ;;  %v284_v59 = vsub.f32 %v233_v44, %v281_v58  ;;  %v283_v60 = vpop.xlane.xlu1 %282 }
 0x25b   :  { %v285_v61 = vsub.f32 %v236_v45, %v283_v60  ;;  %366 = vpow2.f32 %v267_v57 }
 0x25c   :  { %v286_v62 = vmul.f32 1.442695, %v284_v59 }
 0x25d   :  { %v288_v63 = vmul.f32 1.442695, %v285_v61 }
 0x25e   :  { %368 = vpow2.f32 %v286_v62 }
 0x25f   :  { %370 = vpow2.f32 %v288_v63 }
 0x260   :  { %v361_v0 = vpop.eup %360 }
 0x261   :  { %249 = vadd.xlane.f32.xlu0 %v361_v0  ;;  %v363_v1 = vpop.eup %362 }
 0x264   :  { %v365_v2 = vpop.eup %364 }
 0x265   :  { %269 = vadd.xlane.f32.xlu0 %v363_v1  ;;  %251 = vadd.xlane.f32.xlu1 %v365_v2  ;;  %v367_v3 = vpop.eup %366 }
 0x268   :  { %v369_v4 = vpop.eup %368 }
 0x269   :  { %290 = vadd.xlane.f32.xlu0 %v369_v4  ;;  %271 = vadd.xlane.f32.xlu1 %v367_v3  ;;  %v371_v5 = vpop.eup %370 }
 0x26d   :  { %292 = vadd.xlane.f32.xlu1 %v371_v5 }
 0x2ee   :  { %v250_v6 = vpop.xlane.xlu0 %249 }
 0x2ef   :  { %372 = vrcp.f32 %v250_v6 }
 0x2f2   :  { %v270_v7 = vpop.xlane.xlu0 %269  ;;  %v252_v8 = vpop.xlane.xlu1 %251 }
 0x2f3   :  { %374 = vrcp.f32 %v270_v7 }
 0x2f4   :  { %376 = vrcp.f32 %v252_v8 }
 0x2f6   :  { %v291_v9 = vpop.xlane.xlu0 %290  ;;  %v272_v10 = vpop.xlane.xlu1 %271 }
 0x2f7   :  { %378 = vrcp.f32 %v291_v9 }
 0x2f8   :  { %380 = vrcp.f32 %v272_v10 }
 0x2f9   :  { %v373_v11 = vpop.eup %372 }
 0x2fa   :  { %v254_v12 = vmul.f32 %v373_v11, %v361_v0  ;;  %v293_v13 = vpop.xlane.xlu1 %292 }
 0x2fb   :  { %382 = vrcp.f32 %v293_v13 }
 0x2fc   :  { %257 = vst [vmem:[%s479_s5] sm:$0xff] %v254_v12 }
 0x2fd   :  { %v375_v14 = vpop.eup %374 }
 0x2fe   :  { %v377_v15 = vpop.eup %376  ;;  %v274_v16 = vmul.f32 %v375_v14, %v363_v1 }
 0x2ff   :  { %v256_v17 = vmul.f32 %v377_v15, %v365_v2 }
 0x300   :  { %317 = vst [vmem:[%s479_s5 + $0x10] sm:$0xff] %v274_v16 }
 0x301   :  { %v379_v18 = vpop.eup %378  ;;  %258 = vst [vmem:[%s479_s5 + $0x8] sm:$0xff] %v256_v17 }
 0x302   :  { %v381_v19 = vpop.eup %380  ;;  %v295_v20 = vmul.f32 %v379_v18, %v369_v4 }
 0x303   :  { %v276_v21 = vmul.f32 %v381_v19, %v367_v3 }
 0x304   :  { %319 = vst [vmem:[%s479_s5 + $0x20] sm:$0xff] %v295_v20 }
 0x305   :  { %v383_v22 = vpop.eup %382  ;;  %318 = vst [vmem:[%s479_s5 + $0x18] sm:$0xff] %v276_v21 }
 0x306   :  { %v297_v23 = vmul.f32 %v383_v22, %v371_v5 }
 0x308   :  { %320 = vst [vmem:[%s479_s5 + $0x28] sm:$0xff] %v297_v23 }

</bundles_post_ra>
